<compile_context>
chip_gen: v7x
topology: tpu7x:2x2x1
jax: 0.10.0
libtpu: 0.0.40
codegen_flags: <defaults>
</compile_context>

<pallas_src>
import functools
import math

import jax
import jax.numpy as jnp
from jax.experimental import pallas as pl
from jax.experimental.pallas import tpu as pltpu


def _round_up(x, m):
    return ((x + m - 1) // m) * m


def _fused_linear_kernel(x_ref, w_ref, b_ref, scores_ref, deltas_ref, *,
                         out_c, out_b):
    """Fused (cls + bbox) linear heads on one row tile.

    x_ref:      (tile_n, D)     activation tile, native dtype (cast in-kernel)
    w_ref:      (D, P)          fused, 128-lane-padded weight (grid-resident)
    b_ref:      (1, P)          fused, padded f32 bias
    scores_ref: (tile_n, out_c) f32 classification scores
    deltas_ref: (tile_n, out_b) f32 box regression deltas
    """
    x = x_ref[...].astype(w_ref.dtype)          # cast fused into the kernel
    y = (jnp.dot(x, w_ref[...], preferred_element_type=jnp.float32)
         + b_ref[...])                          # (tile_n, P) f32 slab in VMEM
    scores_ref[...] = y[:, :out_c].astype(scores_ref.dtype)
    deltas_ref[...] = y[:, out_c:out_c + out_b].astype(deltas_ref.dtype)


def prepare_fast_rcnn_params(w_cls, b_cls, w_box, b_box,
                             compute_dtype=jnp.bfloat16):
    """One-time parameter preprocessing (hoisted out of the forward path).

    Transposes both PyTorch-layout Linear weights to (D, out), concatenates
    the cls and box heads along the output axis, zero-pads that axis up to a
    multiple of 128 lanes (single lane-dense MXU dot), and casts the weight
    to the matmul dtype.  Returns (w_fused, b_fused, out_c, out_b).
    Use compute_dtype=jnp.float32 if delta accuracy matters (still ~free,
    the kernel is memory-bound).
    """
    out_c = int(w_cls.shape[0])
    out_b = int(w_box.shape[0])
    out_fused = out_c + out_b
    out_pad = _round_up(out_fused, 128)

    w = jnp.concatenate(
        [jnp.asarray(w_cls, jnp.float32).T, jnp.asarray(w_box, jnp.float32).T],
        axis=1)                                            # (D, out_fused)
    w = jnp.pad(w, ((0, 0), (0, out_pad - out_fused)))     # (D, out_pad)
    w = w.astype(compute_dtype)

    b = jnp.concatenate(
        [jnp.asarray(b_cls, jnp.float32), jnp.asarray(b_box, jnp.float32)])
    b = jnp.pad(b, (0, out_pad - out_fused)).reshape(1, out_pad)  # f32 bias

    return w, b, out_c, out_b


def _choose_tile_n(n, d, p, out_widths, x_itemsize, w_itemsize,
                   vmem_budget_bytes=40 * 1024 * 1024):
    """Largest row tile whose VMEM footprint fits a conservative v7x budget.

    Accounts for the real padded P, the real output widths, the real streamed
    x itemsize, and the (default double-buffered) resident weight/bias.
    """
    resident = 2 * (d * p * w_itemsize + p * 4)      # resident fused W + bias
    budget = max(vmem_budget_bytes - resident, 4 * 1024 * 1024)
    per_row = (2 * d * x_itemsize                    # double-buffered x tile
               + 2 * sum(out_widths) * 4             # double-buffered f32 outs
               + p * 4)                              # in-kernel f32 slab
    cap = max(128, (budget // per_row) // 128 * 128)
    tile = min(2048, cap)                            # big tiles amortize the
                                                     # ~0.35us per-step cost
    if n > 2 * 128:
        # Keep >= ~4 grid steps (>= 2 per v7x TensorCore) when rows allow it.
        tile = min(tile, max(128, _round_up(pl.cdiv(n, 4), 128)))
    if n <= tile:
        return int(n)                                # single full-extent block
    return int(tile)


@functools.partial(jax.jit, static_argnames=("out_c", "out_b", "tile_n"))
def fast_rcnn_output_layers_forward(x, w_fused, b_fused, *, out_c, out_b,
                                    tile_n=None):
    """FastRCNNOutputLayers.forward.

    Args:
      x:       (N, C, H, W) or (N, D) per-region features (any float dtype).
      w_fused: (D, P) fused / 128-padded weight from prepare_fast_rcnn_params.
      b_fused: (1, P) fused / padded f32 bias.
    Returns:
      scores (N, out_c) f32, proposal_deltas (N, out_b) f32.
    """
    n = x.shape[0]
    d = math.prod(x.shape[1:]) if x.ndim > 2 else x.shape[1]
    p = w_fused.shape[1]

    # Same flatten order as torch.flatten(x, start_dim=1).  No dtype cast and
    # no row padding here: x streams once, straight from HBM.
    x2 = x.reshape(n, d)

    x_item = jnp.dtype(x2.dtype).itemsize
    w_item = jnp.dtype(w_fused.dtype).itemsize
    if tile_n is None:
        tile_n = _choose_tile_n(n, d, p, (out_c, out_b), x_item, w_item)
    grid = pl.cdiv(n, tile_n)           # trailing partial block is masked

    # VMEM estimate: double-buffered x tile + double-buffered f32 outputs +
    # in-kernel f32 slab + (default double-buffered) resident weight/bias.
    # TODO(synk): for very large heads, pipeline_mode=pl.Buffered(1) on the
    # w_fused/b_fused specs (constant index_map) would halve the weight term.
    est = (2 * tile_n * d * x_item
           + 2 * tile_n * (out_c + out_b) * 4
           + tile_n * p * 4
           + 2 * (d * p * w_item + p * 4))
    vmem_limit = int(min(max(2 * est, 32 * 1024 * 1024), 64 * 1024 * 1024))

    kernel = functools.partial(_fused_linear_kernel, out_c=out_c, out_b=out_b)
    scores, deltas = pl.pallas_call(
        kernel,
        out_shape=(jax.ShapeDtypeStruct((n, out_c), jnp.float32),
                   jax.ShapeDtypeStruct((n, out_b), jnp.float32)),
        grid_spec=pl.GridSpec(
            grid=(grid,),
            in_specs=[
                pl.BlockSpec((tile_n, d), lambda i: (i, 0)),  # x row tile
                pl.BlockSpec((d, p), lambda i: (0, 0)),       # fused W (resident)
                pl.BlockSpec((1, p), lambda i: (0, 0)),       # fused bias
            ],
            out_specs=(
                pl.BlockSpec((tile_n, out_c), lambda i: (i, 0)),
                pl.BlockSpec((tile_n, out_b), lambda i: (i, 0)),
            ),
        ),
        compiler_params=pltpu.CompilerParams(
            dimension_semantics=("parallel",),
            vmem_limit_bytes=vmem_limit,
        ),
    )(x2, w_fused, b_fused)
    return scores, deltas


def _reference_forward(x, w_cls, b_cls, w_box, b_box):
    n = x.shape[0]
    x2 = jnp.asarray(x, jnp.float32).reshape(n, -1)
    scores = jnp.dot(x2, w_cls.T, precision=jax.lax.Precision.HIGHEST) + b_cls
    deltas = jnp.dot(x2, w_box.T, precision=jax.lax.Precision.HIGHEST) + b_box
    return scores, deltas


if __name__ == "__main__":
    # Module config (synthetic, deterministic):
    #   input_shape = dict(channels=4, height=16, width=16) -> input_size D = 1024
    #   num_classes K = 8, cls_agnostic_bbox_reg=False, box_dim = 4
    C, H, W = 4, 16, 16
    D = C * H * W
    NUM_CLASSES = 8
    BOX_DIM = 4
    CLS_OUT = NUM_CLASSES + 1           # 9
    BOX_OUT = NUM_CLASSES * BOX_DIM     # 32

    key = jax.random.PRNGKey(0)
    kwc, kbc, kwb, kbb, kx1, kx2 = jax.random.split(key, 6)

    # Deterministic synthetic parameters (detectron2 uses small normal init).
    w_cls = 0.01 * jax.random.normal(kwc, (CLS_OUT, D), dtype=jnp.float32)
    b_cls = 0.01 * jax.random.normal(kbc, (CLS_OUT,), dtype=jnp.float32)
    w_box = 0.001 * jax.random.normal(kwb, (BOX_OUT, D), dtype=jnp.float32)
    b_box = 0.001 * jax.random.normal(kbb, (BOX_OUT,), dtype=jnp.float32)

    # One-time fusion / padding / cast of the parameters.
    w_fused, b_fused, out_c, out_b = prepare_fast_rcnn_params(
        w_cls, b_cls, w_box, b_box, compute_dtype=jnp.bfloat16)
    w_fused, b_fused = jax.block_until_ready((w_fused, b_fused))

    ok = True

    # Case 1: small NCHW batch; N smaller than a row tile -> single
    # full-extent block, no padding anywhere.
    x1 = jax.random.normal(kx1, (10, C, H, W), dtype=jnp.float32)
    s1, d1 = fast_rcnn_output_layers_forward(
        x1, w_fused, b_fused, out_c=out_c, out_b=out_b)
    jax.block_until_ready((s1, d1))
    rs1, rd1 = _reference_forward(x1, w_cls, b_cls, w_box, b_box)
    assert s1.shape == (10, CLS_OUT) and d1.shape == (10, BOX_OUT)
    ok &= bool(jnp.allclose(s1, rs1, atol=5e-3, rtol=2e-2))
    ok &= bool(jnp.allclose(d1, rd1, atol=5e-3, rtol=2e-2))

    # Case 2: more proposals (already flattened) -> multi-step grid with a
    # masked trailing partial block (272 = 2*128 + 16), no wrapper-side pad.
    x2 = jax.random.normal(kx2, (272, D), dtype=jnp.float32)
    s2, d2 = fast_rcnn_output_layers_forward(
        x2, w_fused, b_fused, out_c=out_c, out_b=out_b)
    jax.block_until_ready((s2, d2))
    rs2, rd2 = _reference_forward(x2, w_cls, b_cls, w_box, b_box)
    assert s2.shape == (272, CLS_OUT) and d2.shape == (272, BOX_OUT)
    ok &= bool(jnp.allclose(s2, rs2, atol=5e-3, rtol=2e-2))
    ok &= bool(jnp.allclose(d2, rd2, atol=5e-3, rtol=2e-2))

    assert ok, "Pallas output mismatch vs reference"

    # TODO(synk): inference()/fast_rcnn_inference (score-thresh filtering,
    # batched NMS, top-k with ragged per-image outputs) is data-dependent
    # control flow with dynamic shapes and has no clean Pallas equivalent;
    # only forward() is implemented here.

    print("KERNEL_OK")
</pallas_src>

<mosaic_0001>
module attributes {stable_mosaic.version = 11 : i64} {
  func.func @_fused_linear_kernel(%arg0: i32, %arg1: memref<10x1024xf32, #tpu.memory_space<vmem>>, %arg2: memref<1024x128xbf16, #tpu.memory_space<vmem>>, %arg3: memref<1x128xf32, #tpu.memory_space<vmem>>, %arg4: memref<10x9xf32, #tpu.memory_space<vmem>>, %arg5: memref<10x32xf32, #tpu.memory_space<vmem>>) attributes {dimension_semantics = [#tpu.dimension_semantics<parallel>], iteration_bounds = array<i64: 1>, scalar_prefetch = 0 : i64, scratch_operands = 0 : i64, tpu.core_type = #tpu.core_type<tc>, window_params = [{transform_indices = @transform_0, window_bounds = array<i64: 10, 1024>}, {pipeline_mode = #tpu.pipeline_mode<synchronous>, transform_indices = @transform_1, window_bounds = array<i64: 1024, 128>}, {pipeline_mode = #tpu.pipeline_mode<synchronous>, transform_indices = @transform_2, window_bounds = array<i64: 1, 128>}, {transform_indices = @transform_3, window_bounds = array<i64: 10, 9>}, {transform_indices = @transform_4, window_bounds = array<i64: 10, 32>}]} {
    %c0 = arith.constant 0 : index
    %c0_0 = arith.constant 0 : index
    %0 = vector.load %arg1[%c0, %c0_0] : memref<10x1024xf32, #tpu.memory_space<vmem>>, vector<10x1024xf32>
    %1 = arith.truncf %0 : vector<10x1024xf32> to vector<10x1024xbf16>
    %c0_1 = arith.constant 0 : index
    %c0_2 = arith.constant 0 : index
    %2 = vector.load %arg2[%c0_1, %c0_2] : memref<1024x128xbf16, #tpu.memory_space<vmem>>, vector<1024x128xbf16>
    %cst = arith.constant dense<0.000000e+00> : vector<10x128xf32>
    %3 = tpu.matmul %1, %2, %cst {dimension_numbers = #tpu.dot_dimension_numbers<[1], [0], [0], [1], [0, 0, 1, 1], [], []>} : vector<10x1024xbf16>, vector<1024x128xbf16>, vector<10x128xf32> -> vector<10x128xf32>
    %c0_3 = arith.constant 0 : index
    %c0_4 = arith.constant 0 : index
    %4 = vector.load %arg3[%c0_3, %c0_4] : memref<1x128xf32, #tpu.memory_space<vmem>>, vector<1x128xf32>
    %5 = vector.broadcast %4 : vector<1x128xf32> to vector<10x128xf32>
    %6 = arith.addf %3, %5 : vector<10x128xf32>
    %7 = vector.extract_strided_slice %6 {offsets = [0, 0], sizes = [10, 9], strides = [1, 1]} : vector<10x128xf32> to vector<10x9xf32>
    %c0_5 = arith.constant 0 : index
    %c0_6 = arith.constant 0 : index
    %8 = vector.load %arg4[%c0_5, %c0_6] : memref<10x9xf32, #tpu.memory_space<vmem>>, vector<10x9xf32>
    tpu.vector_store %arg4[%c0_5, %c0_6], %7 {strides = array<i32>} : memref<10x9xf32, #tpu.memory_space<vmem>>, vector<10x9xf32>,
    %9 = vector.extract_strided_slice %6 {offsets = [0, 9], sizes = [10, 32], strides = [1, 1]} : vector<10x128xf32> to vector<10x32xf32>
    %c0_7 = arith.constant 0 : index
    %c0_8 = arith.constant 0 : index
    %10 = vector.load %arg5[%c0_7, %c0_8] : memref<10x32xf32, #tpu.memory_space<vmem>>, vector<10x32xf32>
    tpu.vector_store %arg5[%c0_7, %c0_8], %9 {strides = array<i32>} : memref<10x32xf32, #tpu.memory_space<vmem>>, vector<10x32xf32>,
    return
  }
  func.func @transform_0(%arg0: i32) -> (i32, i32) {
    %c0_i32 = arith.constant 0 : i32
    %c0_i32_0 = arith.constant 0 : i32
    return %arg0, %c0_i32 : i32, i32
  }
  func.func @transform_1(%arg0: i32) -> (i32, i32) {
    %c0_i32 = arith.constant 0 : i32
    %c0_i32_0 = arith.constant 0 : i32
    %c0_i32_1 = arith.constant 0 : i32
    return %c0_i32, %c0_i32_0 : i32, i32
  }
  func.func @transform_2(%arg0: i32) -> (i32, i32) {
    %c0_i32 = arith.constant 0 : i32
    %c0_i32_0 = arith.constant 0 : i32
    %c0_i32_1 = arith.constant 0 : i32
    return %c0_i32, %c0_i32_0 : i32, i32
  }
  func.func @transform_3(%arg0: i32) -> (i32, i32) {
    %c0_i32 = arith.constant 0 : i32
    %c0_i32_0 = arith.constant 0 : i32
    return %arg0, %c0_i32 : i32, i32
  }
  func.func @transform_4(%arg0: i32) -> (i32, i32) {
    %c0_i32 = arith.constant 0 : i32
    %c0_i32_0 = arith.constant 0 : i32
    return %arg0, %c0_i32 : i32, i32
  }
}

</mosaic_0001>

<bundles_post_ra>
// kernel: fast_rcnn_output_layers_forward.1
= control target key start
LH: loop header
LB: loop body
LE: loop exit
PB: predicated region body
PF: predicated region fallthrough
CT: control target
= control target key end

     0   :  { %10 = vsyncpa [#allocation3], 0  ;;  %s1341_s0 = inlined_call_operand.vmem [shape: f32[10,1024], index: 0, kind: input, shape index: {}]   ;;  %s1342_s1 = inlined_call_operand.vmem [shape: bf16[1024,128], index: 1, kind: input, shape index: {}]   ;;  %s1343_s2 = inlined_call_operand.vmem [shape: f32[1,128], index: 2, kind: input, shape index: {}]   ;;  %s1344_s3 = inlined_call_operand.hbm [shape: f32[10,9], index: 3, kind: output, shape index: {0}]   ;;  %s1345_s4 = inlined_call_operand.hbm [shape: f32[10,32], index: 4, kind: output, shape index: {1}]  }
   0x1   :  { %v932_v0 = vld [vmem:[%s1342_s1 + $0x40] sm:$0xff]   ;;  %v936_v4 = vld [vmem:[%s1342_s1 + $0x48] sm:$0xff]   ;;  %v940_v8 = vld [vmem:[%s1342_s1 + $0x50] sm:$0xff]  }
   0x2   :  { %v933_v1 = vld [vmem:[%s1342_s1 + $0xc0] sm:$0xff]   ;;  %839 = vmatprep.subr.bf16.mxu0 %v932_v0  ;;  %v937_v5 = vld [vmem:[%s1342_s1 + $0xc8] sm:$0xff]   ;;  %v941_v9 = vld [vmem:[%s1342_s1 + $0xd0] sm:$0xff]  }
   0x3   :  { %v934_v2 = vld [vmem:[%s1342_s1] sm:$0xff]   ;;  %861 = vmatprep.subr.bf16.mxu1 %v933_v1  ;;  %v938_v6 = vld [vmem:[%s1342_s1 + $0x8] sm:$0xff]   ;;  %v942_v10 = vld [vmem:[%s1342_s1 + $0x10] sm:$0xff]  }
   0x4   :  { %v935_v3 = vld [vmem:[%s1342_s1 + $0x80] sm:$0xff]   ;;  %840 = vmatpush3.bf16.msra.mxu0 %v934_v2  ;;  %v939_v7 = vld [vmem:[%s1342_s1 + $0x88] sm:$0xff]   ;;  %v943_v11 = vld [vmem:[%s1342_s1 + $0x90] sm:$0xff]  }
   0x5   :  { %862 = vmatpush3.bf16.msra.mxu1 %v935_v3  ;;  %841 = vmatprep.subr.bf16.mxu0 %v936_v4  ;;  %v944_v12 = vld [vmem:[%s1342_s1 + $0x58] sm:$0xff]   ;;  %v948_v16 = vld [vmem:[%s1342_s1 + $0x60] sm:$0xff]   ;;  %v952_v20 = vld [vmem:[%s1342_s1 + $0x68] sm:$0xff]  }
   0x6   :  { %863 = vmatprep.subr.bf16.mxu1 %v937_v5  ;;  %v945_v13 = vld [vmem:[%s1342_s1 + $0xd8] sm:$0xff]   ;;  %v949_v17 = vld [vmem:[%s1342_s1 + $0xe0] sm:$0xff]   ;;  %v953_v21 = vld [vmem:[%s1342_s1 + $0xe8] sm:$0xff]  }
   0x7   :  { %v946_v14 = vld [vmem:[%s1342_s1 + $0x18] sm:$0xff]   ;;  %v950_v18 = vld [vmem:[%s1342_s1 + $0x20] sm:$0xff]   ;;  %v954_v22 = vld [vmem:[%s1342_s1 + $0x28] sm:$0xff]  }
   0x8   :  { %842 = vmatpush3.bf16.msra.mxu0 %v938_v6  ;;  %v947_v15 = vld [vmem:[%s1342_s1 + $0x98] sm:$0xff]   ;;  %v951_v19 = vld [vmem:[%s1342_s1 + $0xa0] sm:$0xff]   ;;  %v955_v23 = vld [vmem:[%s1342_s1 + $0xa8] sm:$0xff]  }
   0x9   :  { %864 = vmatpush3.bf16.msra.mxu1 %v939_v7  ;;  %843 = vmatprep.subr.bf16.mxu0 %v940_v8  ;;  %v956_v24 = vld [vmem:[%s1342_s1 + $0x70] sm:$0xff]   ;;  %v960_v28 = vld [vmem:[%s1342_s1 + $0x78] sm:$0xff]   ;;  %v20_v32 = vld [vmem:[%s1341_s0 + $0x8] sm:$0xff] }
   0xa   :  { %865 = vmatprep.subr.bf16.mxu1 %v941_v9  ;;  %v957_v25 = vld [vmem:[%s1342_s1 + $0xf0] sm:$0xff]   ;;  %v961_v29 = vld [vmem:[%s1342_s1 + $0xf8] sm:$0xff]   ;;  %v28_v33 = vld [vmem:[%s1341_s0 + $0x48] sm:$0x3] }
   0xb   :  { %v958_v26 = vld [vmem:[%s1342_s1 + $0x30] sm:$0xff]   ;;  %v962_v30 = vld [vmem:[%s1342_s1 + $0x38] sm:$0xff]   ;;  %v36_v35 = vpack.c.bf16 %v28_v33, %v20_v32  ;;  %v19_v37 = vld [vmem:[%s1341_s0] sm:$0xff] }
   0xc   :  { %844 = vmatpush3.bf16.msra.mxu0 %v942_v10  ;;  %v959_v27 = vld [vmem:[%s1342_s1 + $0xb0] sm:$0xff]   ;;  %v963_v31 = vld [vmem:[%s1342_s1 + $0xb8] sm:$0xff]   ;;  %v27_v38 = vld [vmem:[%s1341_s0 + $0x40] sm:$0x3] }
   0xd   :  { %866 = vmatpush3.bf16.msra.mxu1 %v943_v11  ;;  %845 = vmatprep.subr.bf16.mxu0 %v944_v12  ;;  %v22_v34 = vld [vmem:[%s1341_s0 + $0x18] sm:$0xff]  ;;  %v35_v40 = vpack.c.bf16 %v27_v38, %v19_v37  ;;  %v21_v41 = vld [vmem:[%s1341_s0 + $0x10] sm:$0xff]  ;;  %v964_v44 = vld [vmem:[%s1342_s1 + $0x140] sm:$0xff]  }
   0xe   :  { %867 = vmatprep.subr.bf16.mxu1 %v945_v13  ;;  %v30_v36 = vld [vmem:[%s1341_s0 + $0x58] sm:$0x3]  ;;  %v29_v42 = vld [vmem:[%s1341_s0 + $0x50] sm:$0x3]  ;;  %594 = vmatprep.mubr.bf16.mxu0 %v36_v35  ;;  %v965_v45 = vld [vmem:[%s1342_s1 + $0x1c0] sm:$0xff]  }
   0xf   :  { %v38_v39 = vpack.c.bf16 %v30_v36, %v22_v34  ;;  %v37_v43 = vpack.c.bf16 %v29_v42, %v21_v41  ;;  %v966_v46 = vld [vmem:[%s1342_s1 + $0x100] sm:$0xff]   ;;  %v968_v48 = vld [vmem:[%s1342_s1 + $0x148] sm:$0xff]   ;;  %v972_v52 = vld [vmem:[%s1342_s1 + $0x150] sm:$0xff]  }
  0x10   :  { %846 = vmatpush3.bf16.msra.mxu0 %v946_v14  ;;  %v967_v47 = vld [vmem:[%s1342_s1 + $0x180] sm:$0xff]   ;;  %v969_v49 = vld [vmem:[%s1342_s1 + $0x1c8] sm:$0xff]   ;;  %v973_v53 = vld [vmem:[%s1342_s1 + $0x1d0] sm:$0xff]  }
  0x11   :  { %868 = vmatpush3.bf16.msra.mxu1 %v947_v15  ;;  %847 = vmatprep.subr.bf16.mxu0 %v948_v16  ;;  %v970_v50 = vld [vmem:[%s1342_s1 + $0x108] sm:$0xff]   ;;  %v974_v54 = vld [vmem:[%s1342_s1 + $0x110] sm:$0xff]   ;;  %v976_v56 = vld [vmem:[%s1342_s1 + $0x158] sm:$0xff]  }
  0x12   :  { %869 = vmatprep.subr.bf16.mxu1 %v949_v17  ;;  %635 = vmatprep.mubr.bf16.mxu1 %v38_v39  ;;  %v971_v51 = vld [vmem:[%s1342_s1 + $0x188] sm:$0xff]   ;;  %v975_v55 = vld [vmem:[%s1342_s1 + $0x190] sm:$0xff]   ;;  %v977_v57 = vld [vmem:[%s1342_s1 + $0x1d8] sm:$0xff]  }
  0x13   :  { %v978_v58 = vld [vmem:[%s1342_s1 + $0x118] sm:$0xff]   ;;  %v980_v60 = vld [vmem:[%s1342_s1 + $0x160] sm:$0xff]   ;;  %v984_v0 = vld [vmem:[%s1342_s1 + $0x168] sm:$0xff]  }
  0x14   :  { %848 = vmatpush3.bf16.msra.mxu0 %v950_v18  ;;  %v979_v59 = vld [vmem:[%s1342_s1 + $0x198] sm:$0xff]   ;;  %v981_v61 = vld [vmem:[%s1342_s1 + $0x1e0] sm:$0xff]   ;;  %v985_v1 = vld [vmem:[%s1342_s1 + $0x1e8] sm:$0xff]  }
  0x15   :  { %870 = vmatpush3.bf16.msra.mxu1 %v951_v19  ;;  %849 = vmatprep.subr.bf16.mxu0 %v952_v20  ;;  %v982_v62 = vld [vmem:[%s1342_s1 + $0x120] sm:$0xff]   ;;  %v986_v2 = vld [vmem:[%s1342_s1 + $0x128] sm:$0xff]   ;;  %v988_v4 = vld [vmem:[%s1342_s1 + $0x170] sm:$0xff]  }
  0x16   :  { %871 = vmatprep.subr.bf16.mxu1 %v953_v21  ;;  %v983_v63 = vld [vmem:[%s1342_s1 + $0x1a0] sm:$0xff]   ;;  %v987_v3 = vld [vmem:[%s1342_s1 + $0x1a8] sm:$0xff]   ;;  %v989_v5 = vld [vmem:[%s1342_s1 + $0x1f0] sm:$0xff]  }
  0x17   :  { %v990_v6 = vld [vmem:[%s1342_s1 + $0x130] sm:$0xff]   ;;  %v992_v8 = vld [vmem:[%s1342_s1 + $0x178] sm:$0xff]   ;;  %v24_v12 = vld [vmem:[%s1341_s0 + $0x28] sm:$0xff] }
  0x18   :  { %850 = vmatpush3.bf16.msra.mxu0 %v954_v22  ;;  %v991_v7 = vld [vmem:[%s1342_s1 + $0x1b0] sm:$0xff]   ;;  %v993_v9 = vld [vmem:[%s1342_s1 + $0x1f8] sm:$0xff]   ;;  %v32_v13 = vld [vmem:[%s1341_s0 + $0x68] sm:$0x3] }
  0x19   :  { %872 = vmatpush3.bf16.msra.mxu1 %v955_v23  ;;  %851 = vmatprep.subr.bf16.mxu0 %v956_v24  ;;  %v994_v10 = vld [vmem:[%s1342_s1 + $0x138] sm:$0xff]   ;;  %v40_v16 = vpack.c.bf16 %v32_v13, %v24_v12  ;;  %v23_v18 = vld [vmem:[%s1341_s0 + $0x20] sm:$0xff]  ;;  %v25_v20 = vld [vmem:[%s1341_s0 + $0x30] sm:$0xff] }
  0x1a   :  { %873 = vmatprep.subr.bf16.mxu1 %v957_v25  ;;  %v995_v11 = vld [vmem:[%s1342_s1 + $0x1b8] sm:$0xff]   ;;  %v31_v19 = vld [vmem:[%s1341_s0 + $0x60] sm:$0x3]  ;;  %v33_v22 = vld [vmem:[%s1341_s0 + $0x70] sm:$0x3] }
  0x1b   :  { %v26_v14 = vld [vmem:[%s1341_s0 + $0x38] sm:$0xff]  ;;  %v39_v21 = vpack.c.bf16 %v31_v19, %v23_v18 }
  0x1c   :  { %852 = vmatpush3.bf16.msra.mxu0 %v958_v26  ;;  %v34_v15 = vld [vmem:[%s1341_s0 + $0x78] sm:$0x3] }
  0x1d   :  { %874 = vmatpush3.bf16.msra.mxu1 %v959_v27  ;;  %853 = vmatprep.subr.bf16.mxu0 %v960_v28  ;;  %v42_v17 = vpack.c.bf16 %v34_v15, %v26_v14 }
  0x1e   :  { %875 = vmatprep.subr.bf16.mxu1 %v961_v29 }
  0x20   :  { %854 = vmatpush3.bf16.msra.mxu0 %v962_v30 }
  0x21   :  { %876 = vmatpush3.bf16.msra.mxu1 %v963_v31  ;;  %883 = vmatprep.subr.bf16.mxu0 %v964_v44 }
  0x22   :  { %905 = vmatprep.subr.bf16.mxu1 %v965_v45 }
  0x23   :  { %595 = vmatmul.mubr.bf16.vlgmr.msra.gmra.mrb[0].mxu0 %v35_v40 }
  0x24   :  { %636 = vmatmul.mubr.bf16.vlgmr.msra.gmra.mrb[0].mxu1 %v37_v43  ;;  %884 = vmatpush3.bf16.msra.mxu0 %v966_v46 }
  0x25   :  { %906 = vmatpush3.bf16.msra.mxu1 %v967_v47  ;;  %885 = vmatprep.subr.bf16.mxu0 %v968_v48 }
  0x26   :  { %907 = vmatprep.subr.bf16.mxu1 %v969_v49 }
  0x28   :  { %886 = vmatpush3.bf16.msra.mxu0 %v970_v50 }
  0x29   :  { %908 = vmatpush3.bf16.msra.mxu1 %v971_v51  ;;  %887 = vmatprep.subr.bf16.mxu0 %v972_v52 }
  0x2a   :  { %909 = vmatprep.subr.bf16.mxu1 %v973_v53 }
  0x2c   :  { %888 = vmatpush3.bf16.msra.mxu0 %v974_v54 }
  0x2d   :  { %910 = vmatpush3.bf16.msra.mxu1 %v975_v55  ;;  %889 = vmatprep.subr.bf16.mxu0 %v976_v56 }
  0x2e   :  { %911 = vmatprep.subr.bf16.mxu1 %v977_v57 }
  0x30   :  { %890 = vmatpush3.bf16.msra.mxu0 %v978_v58 }
  0x31   :  { %912 = vmatpush3.bf16.msra.mxu1 %v979_v59  ;;  %891 = vmatprep.subr.bf16.mxu0 %v980_v60 }
  0x32   :  { %913 = vmatprep.subr.bf16.mxu1 %v981_v61 }
  0x34   :  { %892 = vmatpush3.bf16.msra.mxu0 %v982_v62 }
  0x35   :  { %914 = vmatpush3.bf16.msra.mxu1 %v983_v63  ;;  %893 = vmatprep.subr.bf16.mxu0 %v984_v0 }
  0x36   :  { %915 = vmatprep.subr.bf16.mxu1 %v985_v1 }
  0x38   :  { %894 = vmatpush3.bf16.msra.mxu0 %v986_v2 }
  0x39   :  { %916 = vmatpush3.bf16.msra.mxu1 %v987_v3  ;;  %895 = vmatprep.subr.bf16.mxu0 %v988_v4 }
  0x3a   :  { %917 = vmatprep.subr.bf16.mxu1 %v989_v5 }
  0x3c   :  { %896 = vmatpush3.bf16.msra.mxu0 %v990_v6 }
  0x3d   :  { %918 = vmatpush3.bf16.msra.mxu1 %v991_v7  ;;  %897 = vmatprep.subr.bf16.mxu0 %v992_v8 }
  0x3e   :  { %919 = vmatprep.subr.bf16.mxu1 %v993_v9 }
  0x40   :  { %898 = vmatpush3.bf16.msra.mxu0 %v994_v10 }
  0x41   :  { %920 = vmatpush3.bf16.msra.mxu1 %v995_v11 }
  0x42   :  { %11 = vsyncpa [#allocation5], 0  ;;  %676 = vmatprep.mubr.bf16.mxu0 %v40_v16  ;;  %717 = vmatprep.mubr.bf16.mxu1 %v42_v17  ;;  %v41_v23 = vpack.c.bf16 %v33_v22, %v25_v20  ;;  %v774_v26 = vld [vmem:[%s1343_s2] ss:$0 sm:$0xff]  ;;  %vm726_vm0 = vcmask 72704   ;;  %s1044_s0 = smov [#allocation2]  }
  0x43   :  { %677 = vmatmul.mubr.bf16.vlgmr.msra.gmra.mrb[4].mxu0 %v39_v21  ;;  %s747_s2 = sshll.u32 %s1044_s0, 4  ;;  %vm728_vm1 = vcmask 66560   ;;  %s1045_s20 = smov 119   ;;  %s748_s2 = int_to_ptr.vmem [resolvable:$true] %s747_s2 }
  0x44   :  { %718 = vmatmul.mubr.bf16.vlgmr.msra.gmra.mrb[4].mxu1 %v41_v23  ;;  %s996_s21 = scalar_lea.vmem %s748_s2, 256  ;;  %p1001_p1 = scmp.lt.s32.totalorder %s748_s2, %s748_s2 }
  0x45   :  { %p997_p0 = scmp.ne.s32.totalorder %s748_s2, %s996_s21  ;;  %p1002_p2 = scmp.lt.s32.totalorder %s996_s21, %s996_s21 }
  0x47   :  { %p1003_p3 = por %p1002_p2, %p1001_p1 }
  0x49   :  { %p1004_p4 = pnand %p1003_p3, %p997_p0 }
  0xf6   :  { %v855_v24 = vpop.f32.mrb[0].mxu0 }
  0xf7   :  { %v877_v25 = vpop.f32.mrb[0].mxu1  ;;  %v856_v27 = vpop.f32.mrb[1].mxu0 }
  0xf8   :  { %v857_v28 = vadd.f32 %v856_v27, %v855_v24  ;;  %v878_v29 = vpop.f32.mrb[1].mxu1  ;;  %v858_v30 = vpop.f32.mrb[2].mxu0 }
  0xf9   :  { %v879_v31 = vadd.f32 %v878_v29, %v877_v25  ;;  %v880_v32 = vpop.f32.mrb[2].mxu1  ;;  %v859_v33 = vpop.f32.mrb[3].mxu0 }
  0xfa   :  { %v597_v34 = vadd.f32 %v857_v28, %v774_v26  ;;  %v860_v35 = vadd.f32 %v859_v33, %v858_v30  ;;  %v881_v36 = vpop.f32.mrb[3].mxu1 }
  0xfb   :  { %v882_v37 = vadd.f32 %v881_v36, %v880_v32 }
  0xfc   :  { %v638_v38 = vadd.f32 %v879_v31, %v597_v34  ;;  %v600_v39 = vadd.f32 %v860_v35, %v774_v26 }
  0xfe   :  { %v641_v40 = vadd.f32 %v882_v37, %v600_v39 }
 0x116   :  { %v899_v41 = vpop.f32.mrb[4].mxu0 }
 0x117   :  { %v921_v42 = vpop.f32.mrb[4].mxu1  ;;  %v900_v43 = vpop.f32.mrb[5].mxu0 }
 0x118   :  { %v901_v44 = vadd.f32 %v900_v43, %v899_v41  ;;  %v922_v45 = vpop.f32.mrb[5].mxu1  ;;  %v902_v46 = vpop.f32.mrb[6].mxu0 }
 0x119   :  { %v923_v47 = vadd.f32 %v922_v45, %v921_v42  ;;  %v924_v48 = vpop.f32.mrb[6].mxu1  ;;  %v903_v49 = vpop.f32.mrb[7].mxu0 }
 0x11a   :  { %v679_v50 = vadd.f32 %v901_v44, %v638_v38  ;;  %v904_v51 = vadd.f32 %v903_v49, %v902_v46  ;;  %v925_v52 = vpop.f32.mrb[7].mxu1 }
 0x11b   :  { %v926_v53 = vadd.f32 %v925_v52, %v924_v48 }
 0x11c   :  { %v682_v54 = vadd.f32 %v904_v51, %v641_v40  ;;  %v720_v55 = vadd.f32 %v923_v47, %v679_v50 }
 0x11e   :  { %v723_v56 = vadd.f32 %v926_v53, %v682_v54  ;;  %732 = vrot.lane.b32.xlu0 %v720_v55, %s1045_s20  ;;  %727 = vst.msk [vmem:[#allocation2] sm:$0xff] %vm726_vm0, %v720_v55 }
 0x120   :  { %729 = vst.msk [vmem:[#allocation2 + $0x8] sm:$0x3] %vm728_vm1, %v723_v56 }
 0x121   :  { %1007 = shalt.err (!%p1004_p4)
}
 0x122   :  { %s1008_s24 = scalar_lea.hbm %s1344_s3, 256 }
 0x123   :  { %p1009_p5 = scmp.ne.s32.totalorder %s1344_s3, %s1008_s24  ;;  %p1012_p6 = scmp.lt.u32.totalorder %s1008_s24, %s1344_s3 }
 0x125   :  { %p1014_p7 = pnand %p1012_p6, %p1009_p5 }
 0x127   :  { %1017 = shalt.err (!%p1014_p7)
}
 0x128   :  { %s1046_s29 = smov 128   ;;  %s1047_s30 = smov 8   ;;  %734 = vrot.lane.b32.xlu0 %v723_v56, %s1045_s20  ;;  %vm738_vm2 = vcmask 261120   ;;  %vm740_vm3 = vcmask 254976  }
 0x129   :  { %753 = dma.vmem_to_hbm [thread:$0]  %s748_s2, 256, %s1344_s3, [#allocation3], %s1046_s29, %s1046_s29, %s1047_s30  }
 0x12a   :  { %s1048_s7 = smov [#allocation4]  }
 0x12b   :  { %s759_s8 = sshll.u32 %s1048_s7, 4  ;;  %s760_s8 = int_to_ptr.vmem [resolvable:$true] %s759_s8 }
 0x12c   :  { %s1018_s9 = scalar_lea.vmem %s760_s8, 256  ;;  %p1023_p9 = scmp.lt.s32.totalorder %s760_s8, %s760_s8 }
 0x12d   :  { %p1019_p8 = scmp.ne.s32.totalorder %s760_s8, %s1018_s9  ;;  %p1024_p10 = scmp.lt.s32.totalorder %s1018_s9, %s1018_s9 }
 0x12f   :  { %p1025_p11 = por %p1024_p10, %p1023_p9 }
 0x131   :  { %p1026_p12 = pnand %p1025_p11, %p1019_p8 }
 0x190   :  { %v733_v57 = vpop.permute.xlu0 %732 }
 0x191   :  { %739 = vst.msk [vmem:[#allocation4] sm:$0xff] %vm738_vm2, %v733_v57 }
 0x19a   :  { %v735_v58 = vpop.permute.xlu0 %734 }
 0x19b   :  { %741 = vst.msk [vmem:[#allocation4 + $0x8] sm:$0x3] %vm740_vm3, %v735_v58 }
 0x19c   :  { %1029 = shalt.err (!%p1026_p12)
}
 0x19d   :  { %s1030_s3 = scalar_lea.hbm %s1345_s4, 256 }
 0x19e   :  { %p1031_p13 = scmp.ne.s32.totalorder %s1345_s4, %s1030_s3  ;;  %p1034_p0 = scmp.lt.u32.totalorder %s1030_s3, %s1345_s4 }
 0x1a0   :  { %p1036_p1 = pnand %p1034_p0, %p1031_p13 }
 0x1a2   :  { %1039 = shalt.err (!%p1036_p1)
}
 0x1a3   :  { %765 = dma.vmem_to_hbm [thread:$0]  %s760_s8, 256, %s1345_s4, [#allocation5], %s1046_s29, %s1046_s29, %s1047_s30  }
 0x1a4   :  { %1040 = dma.done.wait [#allocation3], 256  }
 0x1a5   :  { %1041 = vsyncadd [#allocation3], 4294967040 }
 0x1a6   :  { %1042 = dma.done.wait [#allocation5], 256  }
 0x1a7   :  { %1043 = vsyncadd [#allocation5], 4294967040 }
 0x1a8   :  { %772 = vsyncpa [#allocation3], 1 }
 0x1a9   :  { %773 = vsyncpa [#allocation5], 1 }

</bundles_post_ra>
